<compile_context>
chip_gen: v7x
topology: tpu7x:2x2x1
jax: 0.10.0
libtpu: 0.0.40
codegen_flags: <defaults>
</compile_context>

<pallas_src>
import math

import jax
import jax.numpy as jnp
from jax import lax
from jax.experimental import pallas as pl
from jax.experimental.pallas import tpu as pltpu

EPS = 1e-12   # F.normalize default eps
LANE = 128    # vreg lane width
SUBLANE = 8   # f32 sublane count


def _round_up(x, m):
    return (x + m - 1) // m * m


def _l2_normalize(x):
    # F.normalize(x, p=2, dim=1): x / max(||x||_2, eps).
    # rsqrt issues on the EUP slot (otherwise idle here) instead of VALU divide.
    ss = jnp.sum(x * x, axis=1, keepdims=True)
    return x * lax.rsqrt(jnp.maximum(ss, EPS * EPS))


def fused_motsync_kernel(mot_ref, w0_ref, b0_ref, wh_ref, bh_ref,
                         img_ref, w_img_ref, b_img_ref,
                         img_out_ref, mot_out_ref, acc_ref):
    """Fused img projection (K-tiled over the grid) + full mot_encoder.

    Grid axis 0 tiles the img contraction dim K (reduction, "arbitrary").
    mot_ref : (Bp, 1024) bf16     w0_ref : (1024, Ep) bf16   b0_ref : (1, Ep) f32
    wh_ref  : (n_mlp, Ep, Ep) bf16 bh_ref: (n_mlp, 1, Ep) f32
    img_ref : (Bp, tk) bf16       w_img_ref: (tk, Ep) bf16   b_img_ref: (1, Ep) f32
    img_out_ref / mot_out_ref: (Bp, Ep) f32    acc_ref: (Bp, Ep) f32 scratch
    """
    k = pl.program_id(0)

    @pl.when(k == 0)
    def _init():
        acc_ref[...] = jnp.zeros_like(acc_ref)

    # img projection partial product for this K tile (bf16 MXU, f32 accumulate).
    acc_ref[...] += jnp.dot(img_ref[...], w_img_ref[...],
                            preferred_element_type=jnp.float32)

    @pl.when(k == pl.num_programs(0) - 1)
    def _finalize():
        # ---- img embedding: bias + final F.normalize ----
        h_img = acc_ref[...] + b_img_ref[...]
        img_out_ref[...] = _l2_normalize(h_img)

        # ---- mot_encoder: Normalize -> EqualLinear(1024,E) -> ReLU ->
        #      n_mlp x [EqualLinear(E,E) -> ReLU] -> final F.normalize ----
        x = mot_ref[...].astype(jnp.float32)
        x = _l2_normalize(x)
        h = jnp.dot(x.astype(jnp.bfloat16), w0_ref[...],
                    preferred_element_type=jnp.float32) + b0_ref[...]
        h = jnp.maximum(h, 0.0)
        n_mlp = wh_ref.shape[0]
        # Static unrolled loop (n_mlp is small); switch to lax.fori_loop(unroll=True)
        # if n_mlp grows beyond a few layers to bound vreg live ranges.
        for i in range(n_mlp):
            h = jnp.dot(h.astype(jnp.bfloat16), wh_ref[i],
                        preferred_element_type=jnp.float32) + bh_ref[i]
            h = jnp.maximum(h, 0.0)
        mot_out_ref[...] = _l2_normalize(h)


def init_params(key, *, embedding_dim, n_mlp, img_feat_dim, lr_mlp=0.01, k_tile=512):
    """Deterministic EqualLinear-style init, pre-padded to hardware tiles.

    EqualLinear stores weight = randn(out,in)/lr_mul and applies scale =
    (1/sqrt(in))*lr_mul at forward, so the effective weight is randn(out,in)/sqrt(in)
    (lr_mul cancels); bias starts at zero. Weights are transposed to (in,out),
    zero-padded to lane/tile multiples, and stored bf16 for the MXU.
    """
    E = embedding_dim
    E_pad = _round_up(E, LANE)
    K_pad = _round_up(img_feat_dim, k_tile)

    k0, k1, k2 = jax.random.split(key, 3)

    w0 = (jax.random.normal(k0, (E, 1024), jnp.float32) / math.sqrt(1024.0)).T
    w0 = jnp.pad(w0, ((0, 0), (0, E_pad - E))).astype(jnp.bfloat16)          # (1024, Ep)
    b0 = jnp.zeros((1, E_pad), jnp.float32)

    wh = jax.random.normal(k1, (n_mlp, E, E), jnp.float32) / math.sqrt(float(E))
    wh = jnp.transpose(wh, (0, 2, 1))                                         # (n_mlp, in, out)
    wh = jnp.pad(wh, ((0, 0), (0, E_pad - E), (0, E_pad - E))).astype(jnp.bfloat16)
    bh = jnp.zeros((n_mlp, 1, E_pad), jnp.float32)

    # TODO(synk): stand-in linear projection for the external ir_se-50 psp encoder.
    w_img = (jax.random.normal(k2, (img_feat_dim, E), jnp.float32)
             / math.sqrt(float(img_feat_dim)))
    w_img = jnp.pad(w_img, ((0, K_pad - img_feat_dim), (0, E_pad - E))).astype(jnp.bfloat16)
    b_img = jnp.zeros((1, E_pad), jnp.float32)

    return dict(w0=w0, b0=b0, wh=wh, bh=bh, w_img=w_img, b_img=b_img)


def motsync_forward(img, mot, params, *, embedding_dim, k_tile=512):
    """Returns (img_embedding, mot_embedding), each (B, E), L2-normalized along dim=1."""
    B = img.shape[0]
    B_pad = _round_up(B, SUBLANE)
    E_pad = params["w0"].shape[1]
    K_pad = params["w_img"].shape[0]
    n_mlp = params["wh"].shape[0]
    # K tile: multiple of 128; halve k_tile (e.g. 512 for the 64 MiB VMEM budget on
    # v7x vs ~1024-2048 on v6e) when scaling to real feature dims.
    tk = min(k_tile, K_pad)
    assert K_pad % tk == 0
    n_k = K_pad // tk

    img_flat = img.reshape(B, -1)          # torch .view(B, -1) on NCHW
    K = img_flat.shape[1]
    # bf16 inputs halve the HBM->VMEM DMA bytes; in-kernel reductions stay f32.
    img_p = jnp.pad(img_flat.astype(jnp.bfloat16), ((0, B_pad - B), (0, K_pad - K)))
    mot_p = jnp.pad(mot.astype(jnp.bfloat16), ((0, B_pad - B), (0, 0)))

    in_specs = [
        pl.BlockSpec((B_pad, 1024), lambda k: (0, 0)),            # mot (resident)
        pl.BlockSpec((1024, E_pad), lambda k: (0, 0)),            # w0
        pl.BlockSpec((1, E_pad), lambda k: (0, 0)),               # b0
        pl.BlockSpec((n_mlp, E_pad, E_pad), lambda k: (0, 0, 0)), # wh
        pl.BlockSpec((n_mlp, 1, E_pad), lambda k: (0, 0, 0)),     # bh
        pl.BlockSpec((B_pad, tk), lambda k: (0, k)),              # img K tile
        pl.BlockSpec((tk, E_pad), lambda k: (k, 0)),              # w_img K tile
        pl.BlockSpec((1, E_pad), lambda k: (0, 0)),               # b_img
    ]
    out_specs = (
        pl.BlockSpec((B_pad, E_pad), lambda k: (0, 0)),           # img embedding
        pl.BlockSpec((B_pad, E_pad), lambda k: (0, 0)),           # mot embedding
    )
    out_shape = (jax.ShapeDtypeStruct((B_pad, E_pad), jnp.float32),
                 jax.ShapeDtypeStruct((B_pad, E_pad), jnp.float32))

    # Single grid axis = img contraction (reduction) -> "arbitrary". At these shapes
    # there is no independent axis worth marking "parallel" for v7x's 2nd TensorCore
    # (B_pad=8 is one sublane tile, E_pad=128 is one lane tile).
    img_emb_p, mot_emb_p = pl.pallas_call(
        fused_motsync_kernel,
        out_shape=out_shape,
        grid=(n_k,),
        in_specs=in_specs,
        out_specs=out_specs,
        scratch_shapes=[pltpu.VMEM((B_pad, E_pad), jnp.float32)],
        compiler_params=pltpu.CompilerParams(
            dimension_semantics=("arbitrary",),
            vmem_limit_bytes=48 * 1024 * 1024,   # explicit; below v7x's 64 MiB physical
        ),
    )(mot_p, params["w0"], params["b0"], params["wh"], params["bh"],
      img_p, params["w_img"], params["b_img"])

    return img_emb_p[:B, :embedding_dim], mot_emb_p[:B, :embedding_dim]


if __name__ == "__main__":
    B = 2
    C, H, W = 3, 16, 16
    EMBED_DIM = 32
    N_MLP = 2

    key = jax.random.PRNGKey(0)
    k_img, k_mot, k_par = jax.random.split(key, 3)

    img = jax.random.normal(k_img, (B, C, H, W), jnp.float32)   # (batch, 3, img_size, img_size)
    mot = jax.random.normal(k_mot, (B, 1024), jnp.float32)      # (batch, 1024)

    params = init_params(k_par, embedding_dim=EMBED_DIM, n_mlp=N_MLP,
                         img_feat_dim=C * H * W, lr_mlp=0.01, k_tile=512)

    img_emb, mot_emb = motsync_forward(img, mot, params, embedding_dim=EMBED_DIM, k_tile=512)
    jax.block_until_ready((img_emb, mot_emb))

    assert img_emb.shape == (B, EMBED_DIM) and mot_emb.shape == (B, EMBED_DIM)
    # Both outputs must be unit-norm along dim=1 (f32 normalize; bf16 MXU operands).
    assert bool(jnp.allclose(jnp.linalg.norm(img_emb, axis=1), 1.0, atol=1e-3))
    assert bool(jnp.allclose(jnp.linalg.norm(mot_emb, axis=1), 1.0, atol=1e-3))

    print("KERNEL_OK")
</pallas_src>

<mosaic_0001>
module attributes {stable_mosaic.version = 11 : i64} {
  func.func @fused_motsync_kernel(%arg0: i32, %arg1: memref<8x1024xbf16, #tpu.memory_space<vmem>>, %arg2: memref<1024x128xbf16, #tpu.memory_space<vmem>>, %arg3: memref<1x128xf32, #tpu.memory_space<vmem>>, %arg4: memref<2x128x128xbf16, #tpu.memory_space<vmem>>, %arg5: memref<2x1x128xf32, #tpu.memory_space<vmem>>, %arg6: memref<8x512xbf16, #tpu.memory_space<vmem>>, %arg7: memref<512x128xbf16, #tpu.memory_space<vmem>>, %arg8: memref<1x128xf32, #tpu.memory_space<vmem>>, %arg9: memref<8x128xf32, #tpu.memory_space<vmem>>, %arg10: memref<8x128xf32, #tpu.memory_space<vmem>>, %arg11: memref<8x128xf32, #tpu.memory_space<vmem>>) attributes {dimension_semantics = [#tpu.dimension_semantics<arbitrary>], iteration_bounds = array<i64: 2>, scalar_prefetch = 0 : i64, scratch_operands = 1 : i64, tpu.core_type = #tpu.core_type<tc>, window_params = [{pipeline_mode = #tpu.pipeline_mode<synchronous>, transform_indices = @transform_0, window_bounds = array<i64: 8, 1024>}, {pipeline_mode = #tpu.pipeline_mode<synchronous>, transform_indices = @transform_1, window_bounds = array<i64: 1024, 128>}, {pipeline_mode = #tpu.pipeline_mode<synchronous>, transform_indices = @transform_2, window_bounds = array<i64: 1, 128>}, {pipeline_mode = #tpu.pipeline_mode<synchronous>, transform_indices = @transform_3, window_bounds = array<i64: 2, 128, 128>}, {pipeline_mode = #tpu.pipeline_mode<synchronous>, transform_indices = @transform_4, window_bounds = array<i64: 2, 1, 128>}, {transform_indices = @transform_5, window_bounds = array<i64: 8, 512>}, {transform_indices = @transform_6, window_bounds = array<i64: 512, 128>}, {pipeline_mode = #tpu.pipeline_mode<synchronous>, transform_indices = @transform_7, window_bounds = array<i64: 1, 128>}, {pipeline_mode = #tpu.pipeline_mode<synchronous>, transform_indices = @transform_8, window_bounds = array<i64: 8, 128>}, {pipeline_mode = #tpu.pipeline_mode<synchronous>, transform_indices = @transform_9, window_bounds = array<i64: 8, 128>}]} {
    %c0_i32 = arith.constant 0 : i32
    %0 = arith.cmpi eq, %arg0, %c0_i32 : i32
    %1 = arith.extui %0 : i1 to i32
    %c0_i32_0 = arith.constant 0 : i32
    %2 = arith.cmpi ne, %1, %c0_i32_0 : i32
    scf.if %2 {
      %cst_9 = arith.constant 0.000000e+00 : f32
      %12 = vector.broadcast %cst_9 : f32 to vector<8x128xf32>
      %c0_10 = arith.constant 0 : index
      %c0_11 = arith.constant 0 : index
      %13 = vector.load %arg11[%c0_10, %c0_11] : memref<8x128xf32, #tpu.memory_space<vmem>>, vector<8x128xf32>
      tpu.vector_store %arg11[%c0_10, %c0_11], %12 {strides = array<i32>} : memref<8x128xf32, #tpu.memory_space<vmem>>, vector<8x128xf32>,
    } else {
    }
    %c0 = arith.constant 0 : index
    %c0_1 = arith.constant 0 : index
    %3 = vector.load %arg11[%c0, %c0_1] : memref<8x128xf32, #tpu.memory_space<vmem>>, vector<8x128xf32>
    %c0_2 = arith.constant 0 : index
    %c0_3 = arith.constant 0 : index
    %4 = vector.load %arg6[%c0_2, %c0_3] : memref<8x512xbf16, #tpu.memory_space<vmem>>, vector<8x512xbf16>
    %c0_4 = arith.constant 0 : index
    %c0_5 = arith.constant 0 : index
    %5 = vector.load %arg7[%c0_4, %c0_5] : memref<512x128xbf16, #tpu.memory_space<vmem>>, vector<512x128xbf16>
    %cst = arith.constant dense<0.000000e+00> : vector<8x128xf32>
    %6 = tpu.matmul %4, %5, %cst {dimension_numbers = #tpu.dot_dimension_numbers<[1], [0], [0], [1], [0, 0, 1, 1], [], []>} : vector<8x512xbf16>, vector<512x128xbf16>, vector<8x128xf32> -> vector<8x128xf32>
    %7 = arith.addf %3, %6 : vector<8x128xf32>
    %c0_6 = arith.constant 0 : index
    %c0_7 = arith.constant 0 : index
    %8 = vector.load %arg11[%c0_6, %c0_7] : memref<8x128xf32, #tpu.memory_space<vmem>>, vector<8x128xf32>
    tpu.vector_store %arg11[%c0_6, %c0_7], %7 {strides = array<i32>} : memref<8x128xf32, #tpu.memory_space<vmem>>, vector<8x128xf32>,
    %c1_i32 = arith.constant 1 : i32
    %9 = arith.cmpi eq, %arg0, %c1_i32 : i32
    %10 = arith.extui %9 : i1 to i32
    %c0_i32_8 = arith.constant 0 : i32
    %11 = arith.cmpi ne, %10, %c0_i32_8 : i32
    scf.if %11 {
      %c0_9 = arith.constant 0 : index
      %c0_10 = arith.constant 0 : index
      %12 = vector.load %arg11[%c0_9, %c0_10] : memref<8x128xf32, #tpu.memory_space<vmem>>, vector<8x128xf32>
      %c0_11 = arith.constant 0 : index
      %c0_12 = arith.constant 0 : index
      %13 = vector.load %arg8[%c0_11, %c0_12] : memref<1x128xf32, #tpu.memory_space<vmem>>, vector<1x128xf32>
      %14 = vector.broadcast %13 : vector<1x128xf32> to vector<8x128xf32>
      %15 = arith.addf %12, %14 : vector<8x128xf32>
      %16 = arith.mulf %15, %15 : vector<8x128xf32>
      %cst_13 = arith.constant dense<0.000000e+00> : vector<8xf32>
      %17 = vector.multi_reduction <add>, %16, %cst_13 [1] : vector<8x128xf32> to vector<8xf32>
      %18 = vector.shape_cast %17 : vector<8xf32> to vector<8x1xf32>
      %cst_14 = arith.constant 1.000000e-24 : f32
      %19 = vector.broadcast %cst_14 : f32 to vector<8x1xf32>
      %20 = arith.maximumf %18, %19 : vector<8x1xf32>
      %21 = math.rsqrt %20 : vector<8x1xf32>
      %22 = vector.broadcast %21 : vector<8x1xf32> to vector<8x128xf32>
      %23 = arith.mulf %15, %22 : vector<8x128xf32>
      %c0_15 = arith.constant 0 : index
      %c0_16 = arith.constant 0 : index
      %24 = vector.load %arg9[%c0_15, %c0_16] : memref<8x128xf32, #tpu.memory_space<vmem>>, vector<8x128xf32>
      tpu.vector_store %arg9[%c0_15, %c0_16], %23 {strides = array<i32>} : memref<8x128xf32, #tpu.memory_space<vmem>>, vector<8x128xf32>,
      %c0_17 = arith.constant 0 : index
      %c0_18 = arith.constant 0 : index
      %25 = vector.load %arg1[%c0_17, %c0_18] : memref<8x1024xbf16, #tpu.memory_space<vmem>>, vector<8x1024xbf16>
      %26 = arith.extf %25 : vector<8x1024xbf16> to vector<8x1024xf32>
      %27 = arith.mulf %26, %26 : vector<8x1024xf32>
      %cst_19 = arith.constant dense<0.000000e+00> : vector<8xf32>
      %28 = vector.multi_reduction <add>, %27, %cst_19 [1] : vector<8x1024xf32> to vector<8xf32>
      %29 = vector.shape_cast %28 : vector<8xf32> to vector<8x1xf32>
      %cst_20 = arith.constant 1.000000e-24 : f32
      %30 = vector.broadcast %cst_20 : f32 to vector<8x1xf32>
      %31 = arith.maximumf %29, %30 : vector<8x1xf32>
      %32 = math.rsqrt %31 : vector<8x1xf32>
      %33 = vector.broadcast %32 : vector<8x1xf32> to vector<8x1024xf32>
      %34 = arith.mulf %26, %33 : vector<8x1024xf32>
      %35 = arith.truncf %34 : vector<8x1024xf32> to vector<8x1024xbf16>
      %c0_21 = arith.constant 0 : index
      %c0_22 = arith.constant 0 : index
      %36 = vector.load %arg2[%c0_21, %c0_22] : memref<1024x128xbf16, #tpu.memory_space<vmem>>, vector<1024x128xbf16>
      %cst_23 = arith.constant dense<0.000000e+00> : vector<8x128xf32>
      %37 = tpu.matmul %35, %36, %cst_23 {dimension_numbers = #tpu.dot_dimension_numbers<[1], [0], [0], [1], [0, 0, 1, 1], [], []>} : vector<8x1024xbf16>, vector<1024x128xbf16>, vector<8x128xf32> -> vector<8x128xf32>
      %c0_24 = arith.constant 0 : index
      %c0_25 = arith.constant 0 : index
      %38 = vector.load %arg3[%c0_24, %c0_25] : memref<1x128xf32, #tpu.memory_space<vmem>>, vector<1x128xf32>
      %39 = vector.broadcast %38 : vector<1x128xf32> to vector<8x128xf32>
      %40 = arith.addf %37, %39 : vector<8x128xf32>
      %cst_26 = arith.constant 0.000000e+00 : f32
      %41 = vector.broadcast %cst_26 : f32 to vector<8x128xf32>
      %42 = arith.maximumf %40, %41 : vector<8x128xf32>
      %43 = arith.truncf %42 : vector<8x128xf32> to vector<8x128xbf16>
      %c0_27 = arith.constant 0 : index
      %c0_28 = arith.constant 0 : index
      %c0_29 = arith.constant 0 : index
      %44 = vector.load %arg4[%c0_27, %c0_28, %c0_29] : memref<2x128x128xbf16, #tpu.memory_space<vmem>>, vector<1x128x128xbf16>
      %45 = vector.shape_cast %44 : vector<1x128x128xbf16> to vector<128x128xbf16>
      %cst_30 = arith.constant dense<0.000000e+00> : vector<8x128xf32>
      %46 = tpu.matmul %43, %45, %cst_30 {dimension_numbers = #tpu.dot_dimension_numbers<[1], [0], [0], [1], [0, 0, 1, 1], [], []>} : vector<8x128xbf16>, vector<128x128xbf16>, vector<8x128xf32> -> vector<8x128xf32>
      %c0_31 = arith.constant 0 : index
      %c0_32 = arith.constant 0 : index
      %c0_33 = arith.constant 0 : index
      %47 = vector.load %arg5[%c0_31, %c0_32, %c0_33] : memref<2x1x128xf32, #tpu.memory_space<vmem>>, vector<1x1x128xf32>
      %48 = vector.shape_cast %47 : vector<1x1x128xf32> to vector<1x128xf32>
      %49 = vector.broadcast %48 : vector<1x128xf32> to vector<8x128xf32>
      %50 = arith.addf %46, %49 : vector<8x128xf32>
      %cst_34 = arith.constant 0.000000e+00 : f32
      %51 = vector.broadcast %cst_34 : f32 to vector<8x128xf32>
      %52 = arith.maximumf %50, %51 : vector<8x128xf32>
      %53 = arith.truncf %52 : vector<8x128xf32> to vector<8x128xbf16>
      %c1 = arith.constant 1 : index
      %c0_35 = arith.constant 0 : index
      %c0_36 = arith.constant 0 : index
      %54 = vector.load %arg4[%c1, %c0_35, %c0_36] : memref<2x128x128xbf16, #tpu.memory_space<vmem>>, vector<1x128x128xbf16>
      %55 = vector.shape_cast %54 : vector<1x128x128xbf16> to vector<128x128xbf16>
      %cst_37 = arith.constant dense<0.000000e+00> : vector<8x128xf32>
      %56 = tpu.matmul %53, %55, %cst_37 {dimension_numbers = #tpu.dot_dimension_numbers<[1], [0], [0], [1], [0, 0, 1, 1], [], []>} : vector<8x128xbf16>, vector<128x128xbf16>, vector<8x128xf32> -> vector<8x128xf32>
      %c1_38 = arith.constant 1 : index
      %c0_39 = arith.constant 0 : index
      %c0_40 = arith.constant 0 : index
      %57 = vector.load %arg5[%c1_38, %c0_39, %c0_40] : memref<2x1x128xf32, #tpu.memory_space<vmem>>, vector<1x1x128xf32>
      %58 = vector.shape_cast %57 : vector<1x1x128xf32> to vector<1x128xf32>
      %59 = vector.broadcast %58 : vector<1x128xf32> to vector<8x128xf32>
      %60 = arith.addf %56, %59 : vector<8x128xf32>
      %cst_41 = arith.constant 0.000000e+00 : f32
      %61 = vector.broadcast %cst_41 : f32 to vector<8x128xf32>
      %62 = arith.maximumf %60, %61 : vector<8x128xf32>
      %63 = arith.mulf %62, %62 : vector<8x128xf32>
      %cst_42 = arith.constant dense<0.000000e+00> : vector<8xf32>
      %64 = vector.multi_reduction <add>, %63, %cst_42 [1] : vector<8x128xf32> to vector<8xf32>
      %65 = vector.shape_cast %64 : vector<8xf32> to vector<8x1xf32>
      %cst_43 = arith.constant 1.000000e-24 : f32
      %66 = vector.broadcast %cst_43 : f32 to vector<8x1xf32>
      %67 = arith.maximumf %65, %66 : vector<8x1xf32>
      %68 = math.rsqrt %67 : vector<8x1xf32>
      %69 = vector.broadcast %68 : vector<8x1xf32> to vector<8x128xf32>
      %70 = arith.mulf %62, %69 : vector<8x128xf32>
      %c0_44 = arith.constant 0 : index
      %c0_45 = arith.constant 0 : index
      %71 = vector.load %arg10[%c0_44, %c0_45] : memref<8x128xf32, #tpu.memory_space<vmem>>, vector<8x128xf32>
      tpu.vector_store %arg10[%c0_44, %c0_45], %70 {strides = array<i32>} : memref<8x128xf32, #tpu.memory_space<vmem>>, vector<8x128xf32>,
    } else {
    }
    return
  }
  func.func @transform_0(%arg0: i32) -> (i32, i32) {
    %c0_i32 = arith.constant 0 : i32
    %c0_i32_0 = arith.constant 0 : i32
    %c0_i32_1 = arith.constant 0 : i32
    return %c0_i32, %c0_i32_0 : i32, i32
  }
  func.func @transform_1(%arg0: i32) -> (i32, i32) {
    %c0_i32 = arith.constant 0 : i32
    %c0_i32_0 = arith.constant 0 : i32
    %c0_i32_1 = arith.constant 0 : i32
    return %c0_i32, %c0_i32_0 : i32, i32
  }
  func.func @transform_2(%arg0: i32) -> (i32, i32) {
    %c0_i32 = arith.constant 0 : i32
    %c0_i32_0 = arith.constant 0 : i32
    %c0_i32_1 = arith.constant 0 : i32
    return %c0_i32, %c0_i32_0 : i32, i32
  }
  func.func @transform_3(%arg0: i32) -> (i32, i32, i32) {
    %c0_i32 = arith.constant 0 : i32
    %c0_i32_0 = arith.constant 0 : i32
    %c0_i32_1 = arith.constant 0 : i32
    %c0_i32_2 = arith.constant 0 : i32
    return %c0_i32, %c0_i32_0, %c0_i32_1 : i32, i32, i32
  }
  func.func @transform_4(%arg0: i32) -> (i32, i32, i32) {
    %c0_i32 = arith.constant 0 : i32
    %c0_i32_0 = arith.constant 0 : i32
    %c0_i32_1 = arith.constant 0 : i32
    %c0_i32_2 = arith.constant 0 : i32
    return %c0_i32, %c0_i32_0, %c0_i32_1 : i32, i32, i32
  }
  func.func @transform_5(%arg0: i32) -> (i32, i32) {
    %c0_i32 = arith.constant 0 : i32
    %c0_i32_0 = arith.constant 0 : i32
    return %c0_i32, %arg0 : i32, i32
  }
  func.func @transform_6(%arg0: i32) -> (i32, i32) {
    %c0_i32 = arith.constant 0 : i32
    %c0_i32_0 = arith.constant 0 : i32
    return %arg0, %c0_i32 : i32, i32
  }
  func.func @transform_7(%arg0: i32) -> (i32, i32) {
    %c0_i32 = arith.constant 0 : i32
    %c0_i32_0 = arith.constant 0 : i32
    %c0_i32_1 = arith.constant 0 : i32
    return %c0_i32, %c0_i32_0 : i32, i32
  }
  func.func @transform_8(%arg0: i32) -> (i32, i32) {
    %c0_i32 = arith.constant 0 : i32
    %c0_i32_0 = arith.constant 0 : i32
    %c0_i32_1 = arith.constant 0 : i32
    return %c0_i32, %c0_i32_0 : i32, i32
  }
  func.func @transform_9(%arg0: i32) -> (i32, i32) {
    %c0_i32 = arith.constant 0 : i32
    %c0_i32_0 = arith.constant 0 : i32
    %c0_i32_1 = arith.constant 0 : i32
    return %c0_i32, %c0_i32_0 : i32, i32
  }
}

</mosaic_0001>

<bundles_post_ra>
// kernel: tpu_custom_call.1
= control target key start
LH: loop header
LB: loop body
LE: loop exit
PB: predicated region body
PF: predicated region fallthrough
CT: control target
= control target key end

     0   :  { %s3156_s0 = inlined_call_operand.hbm [shape: bf16[8,1024], index: 0, kind: input, shape index: {}]   ;;  %s3157_s1 = inlined_call_operand.hbm [shape: bf16[1024,128], index: 1, kind: input, shape index: {}]   ;;  %s3158_s2 = inlined_call_operand.vmem [shape: f32[1,128], index: 2, kind: input, shape index: {}]   ;;  %s3159_s3 = inlined_call_operand.hbm [shape: bf16[2,128,128], index: 3, kind: input, shape index: {}]   ;;  %s3160_s4 = inlined_call_operand.vmem [shape: f32[2,1,128], index: 4, kind: input, shape index: {}]   ;;  %s3161_s5 = inlined_call_operand.hbm [shape: bf16[8,1024], index: 5, kind: input, shape index: {}]   ;;  %s3162_s6 = inlined_call_operand.hbm [shape: bf16[1024,128], index: 6, kind: input, shape index: {}]   ;;  %s3163_s7 = inlined_call_operand.vmem [shape: f32[1,128], index: 7, kind: input, shape index: {}]   ;;  %s3164_s8 = inlined_call_operand.hbm [shape: f32[8,128], index: 8, kind: output, shape index: {0}]   ;;  %s3165_s9 = inlined_call_operand.hbm [shape: f32[8,128], index: 9, kind: output, shape index: {1}]  }
   0x1   :  { %3182 = sst [smem:[#allocation22_spill]] %s3157_s1 }
   0x2   :  { %3183 = sst [smem:[#allocation23_spill]] %s3161_s5 }
   0x3   :  { %3184 = sst [smem:[#allocation24_spill]] %s3164_s8 }
   0x4   :  { %3185 = sst [smem:[#allocation25_spill]] %s3165_s9 }
   0x5   :  { %15 = vsyncpa [#allocation4], 0 }
   0x6   :  { %16 = vsyncpa [#allocation7], 0 }
   0x7   :  { %17 = vsyncpa [#allocation10], 0 }
   0x8   :  { %19 = vsyncpa [#allocation10 + $0x1], 0 }
   0x9   :  { %20 = vsyncpa [#allocation5], 0 }
   0xa   :  { %21 = vsyncpa [#allocation14], 0  ;;  %s2755_s30 = smov 0   ;;  %s2757_s10 = smov 0  }
   0xb   :  { %s2759_s11 = smov 0   ;;  %s2761_s12 = smov 0  }
   0xc LB: > { %s2774_s13 = sadd.s32 4294967295, %s2691_s12   ;;  %p152_p0 = scmp.ne.s32.totalorder %s2683_s10, %s2679_s30  ;;  %s2691_s12 = sphi %s2761_s12, %s3210_s12   ;;  %s2687_s11 = sphi %s2759_s11, %s3214_s11   ;;  %s2683_s10 = sphi %s2757_s10, %s3213_s10   ;;  %s2679_s30 = sphi %s2755_s30, %s3212_s30  }
   0xd   : > { %p3166_p1 = scmp.eq.s32.totalorder %s2774_s13, 0  ;;  %p1891_p2 = scmp.ge.s32.totalorder %s2691_s12, 1 }
   0xe   : > { %p252_p3 = scmp.lt.s32.totalorder %s2691_s12, 3  ;;  %s2693_s16 = smov [#allocation6]  }
   0xf   : > { %p2783_p5 = por %p3166_p1, %p152_p0  ;;  %s275_s17 = sshll.u32 %s2693_s16, 4  ;;  %s276_s17 = int_to_ptr.vmem [resolvable:$true] %s275_s17 }
  0x10   : > { %p2787_p6 = pnand %p1891_p2, %p252_p3  ;;  %s2800_s19 = sadd.s32 1, %s2691_s12  }
  0x11   : > { %s3186_s14 = scalar_select %p2783_p5, 1, 0 }
  0x12   : > { %s3187_s15 = scalar_select %p2787_p6, 1, 0 }
  0x13   : > { %p2253_p7 = pneg %p2787_p6  ;;  %3189 = sst [smem:[#allocation20_spill]] %s2800_s19 }
  0x14   : > { %s139_s20 = sadd.s32 1, %s2687_s11  ;;  %s136_s21 = ssub.s32 %s2691_s12, %s2800_s19 }
  0x15   : > { %p2795_p8 = pnand %p2253_p7, %p3166_p1  ;;  %s3190_s1 = sld [smem:[#allocation22_spill]] }
  0x17   : > { %s3188_s18 = scalar_select %p2795_p8, 1, 0 }
  0x18   : > { %p2813_p10 = pneg %p2795_p8 }
  0x1b   : > { %s2445_s24 = scalar_lea.hbm %s3190_s1, 8192 }
  0x1c   : > { %p2446_p9 = scmp.ne.s32.totalorder %s3190_s1, %s2445_s24  ;;  %p2452_p13 = scmp.lt.u32.totalorder %s2445_s24, %s3190_s1 }
  0x1e   : > { %p2448_p11 = pnand %p2813_p10, %p2446_p9 }
  0x20   : > { %p2449_p12 = pneg %p2448_p11 }
  0x22   : > { %p2454_p0 = pnand %p2452_p13, %p2449_p12 }
  0x24   : > { %2457 = shalt.err (!%p2454_p0)
}
  0x25   : > { %s2458_s30 = scalar_lea.vmem %s276_s17, 8192  ;;  %p2466_p4 = scmp.lt.s32.totalorder %s276_s17, %s276_s17 }
  0x26   : > { %p2459_p2 = scmp.ne.s32.totalorder %s276_s17, %s2458_s30  ;;  %p2467_p1 = scmp.lt.s32.totalorder %s2458_s30, %s2458_s30 }
  0x28   : > { %p2461_p3 = pnand %p2459_p2, %p2813_p10  ;;  %p2468_p5 = por %p2467_p1, %p2466_p4 }
  0x2a   : > { %p2462_p7 = pneg %p2461_p3 }
  0x2c   : > { %p2469_p6 = pnand %p2468_p5, %p2462_p7 }
  0x2e   : > { %2472 = shalt.err (!%p2469_p6)
}
  0x2f   : > { %s3173_s16 = smov 64   ;;  %s3177_s22 = smov 4  }
  0x30   : > { %2259 = dma.hbm_to_vmem [thread:$0]  (!%p2795_p8), %s3190_s1, 8192, %s276_s17, [#allocation7], %s3173_s16, %s3173_s16, %s3177_s22  }
  0x31   : > { %p137_p1 = scmp.eq.s32.totalorder %s136_s21, 0  ;;  %p146_p4 = scmp.ne.s32.totalorder %s2687_s11, %s2683_s10 }
  0x32   : > { %p147_p5 = scmp.eq.s32.totalorder %s2691_s12, 0  ;;  %p2273_p6 = scmp.lt.s32.totalorder %s2691_s12, 2 }
  0x33   : > { %s2837_s25 = scalar_select %p137_p1, %s2687_s11, %s139_s20  }
  0x34   : > { %p148_p9 = por %p147_p5, %p146_p4  ;;  %s311_s26 = sand.u32 1, %s2691_s12  }
  0x35   : > { %3192 = sst [smem:[#allocation21_spill]] %s2837_s25  ;;  %s313_s28 = sand.u32 1, %s2687_s11  }
  0x36   : > { %s1896_s29 = sshll.u32 %s313_s28, 4  ;;  %s2037_s30 = sshll.u32 %s2691_s12, 8 }
  0x37   : > { %s3193_s5 = sld [smem:[#allocation23_spill]]  ;;  %s315_s17 = scalar_lea.vmem [#allocation9], %s1896_s29 }
  0x38   : > { %s323_s21 = sshll.u32 %s315_s17, 4  ;;  %p2847_p11 = pnand %p2273_p6, %p148_p9  ;;  %s2851_s21 = int_to_ptr.vmem [resolvable:$true] %s323_s21 }
  0x39   : > { %s2853_s20 = sshll.u32 %s313_s28, 8  ;;  %s2855_s24 = scalar_lea.sflag [#allocation10], %s311_s26 }
  0x3a   : > { %s3194_s23 = scalar_select %p2847_p11, 1, 0 }
  0x3b   : > { %p3179_p13 = pneg %p2847_p11 }
  0x3d   : > { %s2845_s8 = scalar_lea.hbm %s3193_s5, %s2037_s30  ;;  %s2478_s30 = scalar_lea.hbm %s3193_s5, 512 }
  0x3e   : > { %s2473_s9 = scalar_lea.hbm %s2845_s8, 256  ;;  %p2479_p3 = scmp.lt.u32.totalorder %s2845_s8, %s3193_s5 }
  0x3f   : > { %p2474_p12 = scmp.ne.s32.totalorder %s2845_s8, %s2473_s9  ;;  %p2480_p7 = scmp.lt.u32.totalorder %s2478_s30, %s2473_s9 }
  0x40   : > { %p2482_p4 = scmp.lt.u32.totalorder %s2473_s9, %s2845_s8 }
  0x41   : > { %p2476_p0 = pnand %p3179_p13, %p2474_p12  ;;  %p2481_p1 = por %p2480_p7, %p2479_p3 }
  0x43   : > { %p2477_p2 = pneg %p2476_p0  ;;  %p2483_p5 = por %p2482_p4, %p2481_p1 }
  0x45   : > { %p2484_p6 = pnand %p2483_p5, %p2477_p2 }
  0x47   : > { %2487 = shalt.err (!%p2484_p6)
}
  0x48   : > { %s2488_s26 = scalar_lea.vmem %s2851_s21, 256  ;;  %s2696_s28 = smov [#allocation9]  }
  0x49   : > { %p2489_p9 = scmp.ne.s32.totalorder %s2851_s21, %s2488_s26  ;;  %s2493_s19 = sshll.u32 %s2696_s28, 4  ;;  %s2494_s19 = int_to_ptr.vmem [resolvable:$false] %s2493_s19 }
  0x4a   : > { %s2495_s16 = scalar_lea.vmem %s2494_s19, 512  ;;  %p2496_p8 = scmp.lt.s32.totalorder %s2851_s21, %s2494_s19 }
  0x4b   : > { %p2491_p12 = pnand %p2489_p9, %p3179_p13  ;;  %p2497_p3 = scmp.lt.s32.totalorder %s2495_s16, %s2488_s26 }
  0x4d   : > { %p2492_p0 = pneg %p2491_p12  ;;  %p2498_p7 = por %p2497_p3, %p2496_p8 }
  0x4f   : > { %p2499_p1 = pnand %p2498_p7, %p2492_p0 }
  0x51   : > { %2502 = shalt.err (!%p2499_p1)
}
  0x52   : > { %2266 = dma.hbm_to_vmem [thread:$0]  (!%p2847_p11), %s2845_s8, 256, %s2851_s21, %s2855_s24  }
  0x53   : > { %s334_s9 = scalar_lea.vmem [#allocation11], %s2853_s20  ;;  %s2697_s30 = smov [#allocation3]  }
  0x54   : > { %s341_s29 = sshll.u32 %s334_s9, 4  ;;  %s265_s17 = sshll.u32 %s2697_s30, 4  ;;  %s2884_s29 = int_to_ptr.vmem [resolvable:$true] %s341_s29  ;;  %s266_s17 = int_to_ptr.vmem [resolvable:$true] %s265_s17 }
  0x55   : > { %s2503_s19 = scalar_lea.hbm %s3156_s0, 512 }
  0x56   : > { %p2504_p8 = scmp.ne.s32.totalorder %s3156_s0, %s2503_s19  ;;  %p2510_p5 = scmp.lt.u32.totalorder %s2503_s19, %s3156_s0 }
  0x58   : > { %p2506_p2 = pnand %p2504_p8, %p2813_p10 }
  0x5a   : > { %p2507_p4 = pneg %p2506_p2 }
  0x5c   : > { %p2512_p6 = pnand %p2510_p5, %p2507_p4 }
  0x5e   : > { %2515 = shalt.err (!%p2512_p6)
}
  0x5f   : > { %s2516_s21 = scalar_lea.vmem %s266_s17, 512  ;;  %p2524_p3 = scmp.lt.s32.totalorder %s266_s17, %s266_s17 }
  0x60   : > { %p2517_p9 = scmp.ne.s32.totalorder %s266_s17, %s2516_s21  ;;  %p2525_p7 = scmp.lt.s32.totalorder %s2516_s21, %s2516_s21 }
  0x62   : > { %p2519_p12 = pnand %p2517_p9, %p2813_p10  ;;  %p2526_p1 = por %p2525_p7, %p2524_p3 }
  0x64   : > { %p2520_p0 = pneg %p2519_p12 }
  0x66   : > { %p2527_p13 = pnand %p2526_p1, %p2520_p0 }
  0x68   : > { %2530 = shalt.err (!%p2527_p13)
}
  0x69   : > { %p3195_p8 = scmp.ne.s32.totalorder %s3188_s18, 0  ;;  %s2698_s1 = smov [#allocation8]  }
  0x6a   : > { %s291_s9 = sshll.u32 %s2698_s1, 4  ;;  %s2038_s30 = sshll.u32 %s2691_s12, 12  ;;  %s292_s9 = int_to_ptr.vmem [resolvable:$true] %s291_s9 }
  0x6b   : > { %2256 = dma.hbm_to_vmem [thread:$0]  (!%p3195_p8), %s3156_s0, 512, %s266_s17, [#allocation4]  }
  0x6c   : > { %s2908_s19 = scalar_lea.hbm %s3162_s6, %s2038_s30  ;;  %s2531_s21 = scalar_lea.hbm %s3159_s3, 2048 }
  0x6d   : > { %p2532_p13 = scmp.ne.s32.totalorder %s3159_s3, %s2531_s21  ;;  %p2538_p5 = scmp.lt.u32.totalorder %s2531_s21, %s3159_s3 }
  0x6f   : > { %p2534_p2 = pnand %p2532_p13, %p2813_p10 }
  0x71   : > { %p2535_p4 = pneg %p2534_p2 }
  0x73   : > { %p2540_p6 = pnand %p2538_p5, %p2535_p4 }
  0x75   : > { %2543 = shalt.err (!%p2540_p6)
}
  0x76   : > { %s2544_s12 = scalar_lea.vmem %s292_s9, 2048  ;;  %p2552_p3 = scmp.lt.s32.totalorder %s292_s9, %s292_s9 }
  0x77   : > { %p2545_p9 = scmp.ne.s32.totalorder %s292_s9, %s2544_s12  ;;  %p2553_p7 = scmp.lt.s32.totalorder %s2544_s12, %s2544_s12 }
  0x79   : > { %p2547_p12 = pnand %p2545_p9, %p2813_p10  ;;  %p2554_p1 = por %p2553_p7, %p2552_p3 }
  0x7b   : > { %p2548_p0 = pneg %p2547_p12 }
  0x7d   : > { %p2555_p11 = pnand %p2554_p1, %p2548_p0 }
  0x7f   : > { %2558 = shalt.err (!%p2555_p11)
}
  0x80   : > { %s3196_s5 = smov 4   ;;  %s3197_s25 = smov 64  }
  0x81   : > { %2262 = dma.hbm_to_vmem [thread:$0]  (!%p3195_p8), %s3159_s3, 2048, %s292_s9, [#allocation7], %s3197_s25, %s3197_s25, %s3196_s5  }
  0x82   : > { %s2559_s27 = scalar_lea.hbm %s2908_s19, 4096  ;;  %p3198_p13 = scmp.ne.s32.totalorder %s3194_s23, 0 }
  0x83   : > { %p2560_p10 = scmp.ne.s32.totalorder %s2908_s19, %s2559_s27  ;;  %s2564_s28 = scalar_lea.hbm %s3162_s6, 8192 }
  0x84   : > { %p3199_p2 = pneg %p3198_p13  ;;  %p2565_p5 = scmp.lt.u32.totalorder %s2908_s19, %s3162_s6 }
  0x85   : > { %p2566_p6 = scmp.lt.u32.totalorder %s2564_s28, %s2559_s27  ;;  %p2568_p12 = scmp.lt.u32.totalorder %s2559_s27, %s2908_s19 }
  0x86   : > { %p2562_p4 = pnand %p2560_p10, %p3199_p2 }
  0x87   : > { %p2567_p9 = por %p2566_p6, %p2565_p5 }
  0x88   : > { %p2563_p11 = pneg %p2562_p4 }
  0x89   : > { %p2569_p0 = por %p2568_p12, %p2567_p9 }
  0x8b   : > { %p2570_p3 = pnand %p2569_p0, %p2563_p11 }
  0x8d   : > { %2573 = shalt.err (!%p2570_p3)
}
  0x8e   : > { %s2574_s9 = scalar_lea.vmem %s2884_s29, 4096  ;;  %p3200_p7 = pmov %p3199_p2 }
  0x8f   : > { %p2575_p8 = scmp.ne.s32.totalorder %s2884_s29, %s2574_s9  ;;  %s2699_s8 = smov [#allocation11]  }
  0x90   : > { %s2579_s21 = sshll.u32 %s2699_s8, 4  ;;  %s2580_s21 = int_to_ptr.vmem [resolvable:$false] %s2579_s21 }
  0x91   : > { %p2577_p1 = pnand %p2575_p8, %p3200_p7  ;;  %s2581_s17 = scalar_lea.vmem %s2580_s21, 8192 }
  0x92   : > { %p2582_p2 = scmp.lt.s32.totalorder %s2884_s29, %s2580_s21  ;;  %p2583_p4 = scmp.lt.s32.totalorder %s2581_s17, %s2574_s9 }
  0x93   : > { %p2578_p10 = pneg %p2577_p1 }
  0x94   : > { %p2584_p5 = por %p2583_p4, %p2582_p2 }
  0x96   : > { %p2585_p6 = pnand %p2584_p5, %p2578_p10 }
  0x98   : > { %2588 = shalt.err (!%p2585_p6)
}
  0x99   : > { %2269 = dma.hbm_to_vmem [thread:$0]  (!%p3198_p13), %s2908_s19, 4096, %s2884_s29, %s2855_s24, %s3197_s25, %s3197_s25, %s3196_s5  }
  0x9a   : > { %p3201_p11 = scmp.ne.s32.totalorder %s3187_s15, 0 }
  0x9b   : > { %p3202_p9 = scmp.eq.s32.totalorder (!%p3201_p11), %s2774_s13, 0 }
  0x9c   : > { %353 = sbr.rel (%p3201_p11) target bundleno = 1360 (0x550), region = 52 }
  0xa3   : > { %2658 = dma.done.wait (%p3202_p9), [#allocation4], 512   ;;  %p3203_p12 = pmov %p3202_p9 }
  0xa4   : > { %p3204_p0 = pmov %p3202_p9 }
  0xa5   : > { %2660 = vsyncadd (%p3203_p12), [#allocation4], 4294966784 }
  0xa6   : > { %2662 = dma.done.wait (%p3204_p0), [#allocation7], 10240   ;;  %p3205_p3 = pmov %p3204_p0 }
  0xa7   : > { %s367_s23 = sand.u32 1, %s2774_s13   ;;  %s369_s24 = sand.u32 1, %s2683_s10  }
  0xa8   : > { %2664 = vsyncadd (%p3205_p3), [#allocation7], 4294957056  ;;  %s2970_s29 = sshll.u32 %s369_s24, 4  ;;  %s368_s15 = scalar_lea.sflag [#allocation10], %s367_s23 }
  0xa9   : > { %s371_s19 = scalar_lea.vmem [#allocation9], %s2970_s29  ;;  %p3206_p13 = scmp.ne.s32.totalorder %s3186_s14, 0 }
  0xab   : > { %2666 = dma.done.wait (%p3206_p13), %s368_s15, 4352  }
  0xac   : > { %2668 = vsyncadd (%p3206_p13), %s368_s15, 4294962944  ;;  %s1907_s22 = sshll.u32 %s369_s24, 8  ;;  %p3207_p8 = scmp.ne.s32.totalorder %s2774_s13, 0 }
  0xad   : > { %s2977_s12 = scalar_lea.vmem [#allocation11], %s1907_s22  ;;  %v2700_v0 = vmov (!%p3207_p8), 0.0  }
  0xae   : > { %421 = sbr.rel (%p3207_p8) target bundleno = 181 (0xb5), region = 76  ;;  %422 = vst [vmem:[#allocation2] sm:$0xff] (!%p3207_p8), %v2700_v0 }
  0xb5 PF: > { %v2323_v1 = vld [vmem:[%s2977_s12 + $0x40] sm:$0xff]   ;;  %v2327_v5 = vld [vmem:[%s2977_s12 + $0x48] sm:$0xff]   ;;  %v2331_v9 = vld [vmem:[%s2977_s12 + $0x50] sm:$0xff]   ;;  %p1945_p7 = scmp.ne.s32.totalorder %s2774_s13, 1 }
  0xb6   : > { %v2324_v2 = vld [vmem:[%s2977_s12 + $0xc0] sm:$0xff]   ;;  %2039 = vmatprep.subr.bf16.mxu0 %v2323_v1  ;;  %v2328_v6 = vld [vmem:[%s2977_s12 + $0xc8] sm:$0xff]   ;;  %v2332_v10 = vld [vmem:[%s2977_s12 + $0xd0] sm:$0xff]   ;;  %vm2702_vm0 = vmmov (!%p1945_p7), 0  }
  0xb7   : > { %v2325_v3 = vld [vmem:[%s2977_s12] sm:$0xff]   ;;  %2061 = vmatprep.subr.bf16.mxu1 %v2324_v2  ;;  %v2329_v7 = vld [vmem:[%s2977_s12 + $0x8] sm:$0xff]   ;;  %v2333_v11 = vld [vmem:[%s2977_s12 + $0x10] sm:$0xff]  }
  0xb8   : > { %v2326_v4 = vld [vmem:[%s2977_s12 + $0x80] sm:$0xff]   ;;  %2040 = vmatpush3.bf16.msra.mxu0 %v2325_v3  ;;  %v2330_v8 = vld [vmem:[%s2977_s12 + $0x88] sm:$0xff]   ;;  %v2334_v12 = vld [vmem:[%s2977_s12 + $0x90] sm:$0xff]  }
  0xb9   : > { %2062 = vmatpush3.bf16.msra.mxu1 %v2326_v4  ;;  %2041 = vmatprep.subr.bf16.mxu0 %v2327_v5  ;;  %v2335_v13 = vld [vmem:[%s2977_s12 + $0x58] sm:$0xff]   ;;  %v2339_v17 = vld [vmem:[%s2977_s12 + $0x60] sm:$0xff]   ;;  %v2343_v21 = vld [vmem:[%s2977_s12 + $0x68] sm:$0xff]  }
  0xba   : > { %2063 = vmatprep.subr.bf16.mxu1 %v2328_v6  ;;  %v2336_v14 = vld [vmem:[%s2977_s12 + $0xd8] sm:$0xff]   ;;  %v2340_v18 = vld [vmem:[%s2977_s12 + $0xe0] sm:$0xff]   ;;  %v2344_v22 = vld [vmem:[%s2977_s12 + $0xe8] sm:$0xff]  }
  0xbb   : > { %v2337_v15 = vld [vmem:[%s2977_s12 + $0x18] sm:$0xff]   ;;  %v2341_v19 = vld [vmem:[%s2977_s12 + $0x20] sm:$0xff]   ;;  %v2345_v23 = vld [vmem:[%s2977_s12 + $0x28] sm:$0xff]  }
  0xbc   : > { %2042 = vmatpush3.bf16.msra.mxu0 %v2329_v7  ;;  %v2338_v16 = vld [vmem:[%s2977_s12 + $0x98] sm:$0xff]   ;;  %v2342_v20 = vld [vmem:[%s2977_s12 + $0xa0] sm:$0xff]   ;;  %v2346_v24 = vld [vmem:[%s2977_s12 + $0xa8] sm:$0xff]  }
  0xbd   : > { %2064 = vmatpush3.bf16.msra.mxu1 %v2330_v8  ;;  %2043 = vmatprep.subr.bf16.mxu0 %v2331_v9  ;;  %v2347_v25 = vld [vmem:[%s2977_s12 + $0x70] sm:$0xff]   ;;  %v2351_v29 = vld [vmem:[%s2977_s12 + $0x78] sm:$0xff]   ;;  %v798_v52 = vld [vmem:[#allocation3] sm:$0xff] (!%p1945_p7) }
  0xbe   : > { %2065 = vmatprep.subr.bf16.mxu1 %v2332_v10  ;;  %v2348_v26 = vld [vmem:[%s2977_s12 + $0xf0] sm:$0xff]   ;;  %v2352_v30 = vld [vmem:[%s2977_s12 + $0xf8] sm:$0xff]   ;;  %v799_v53 = vld [vmem:[#allocation3 + $0x8] sm:$0xff] (!%p1945_p7)  ;;  %v3018_v55 = vunpack.c.l.bf16 (!%p1945_p7), %v798_v52  ;;  %v3020_v56 = vunpack.c.h.bf16 (!%p1945_p7), %v798_v52 }
  0xbf   : > { %v2349_v27 = vld [vmem:[%s2977_s12 + $0x30] sm:$0xff]   ;;  %v2353_v31 = vld [vmem:[%s2977_s12 + $0x38] sm:$0xff]   ;;  %v3022_v57 = vunpack.c.l.bf16 (!%p1945_p7), %v799_v53  ;;  %v3024_v58 = vunpack.c.h.bf16 (!%p1945_p7), %v799_v53  ;;  %v2359_v60 = vld [vmem:[#allocation6 + $0x40] sm:$0xff] (!%p1945_p7)  }
  0xc0   : > { %2044 = vmatpush3.bf16.msra.mxu0 %v2333_v11  ;;  %v2350_v28 = vld [vmem:[%s2977_s12 + $0xb0] sm:$0xff]   ;;  %v2354_v32 = vld [vmem:[%s2977_s12 + $0xb8] sm:$0xff]   ;;  %v810_v62 = vmul.f32 (!%p1945_p7), %v3018_v55, %v3018_v55  ;;  %v811_v63 = vmul.f32 (!%p1945_p7), %v3020_v56, %v3020_v56  ;;  %v2360_v1 = vld [vmem:[#allocation6 + $0xc0] sm:$0xff] (!%p1945_p7)  }
  0xc1   : > { %2066 = vmatpush3.bf16.msra.mxu1 %v2334_v12  ;;  %2045 = vmatprep.subr.bf16.mxu0 %v2335_v13  ;;  %v424_v33 = vld [vmem:[%s371_s19] sm:$0xff]  ;;  %v425_v34 = vld [vmem:[%s371_s19 + $0x8] sm:$0xff]  ;;  %v812_v0 = vmul.f32 (!%p1945_p7), %v3022_v57, %v3022_v57  ;;  %v813_v4 = vmul.f32 (!%p1945_p7), %v3024_v58, %v3024_v58 }
  0xc2   : > { %2067 = vmatprep.subr.bf16.mxu1 %v2336_v14  ;;  %v1909_v35 = vcombine.low %v424_v33, %v424_v33  ;;  %v1910_v36 = vcombine.high %v424_v33, %v424_v33  ;;  %v1911_v37 = vcombine.low %v425_v34, %v425_v34  ;;  %v1912_v38 = vcombine.high %v425_v34, %v425_v34  ;;  %v423_v47 = vld [vmem:[#allocation2] sm:$0xff]  ;;  %v800_v54 = vld [vmem:[#allocation3 + $0x10] sm:$0xff] (!%p1945_p7)  ;;  %v2361_v2 = vld [vmem:[#allocation6] sm:$0xff] (!%p1945_p7)  }
  0xc3   : > { %v801_v59 = vld [vmem:[#allocation3 + $0x18] sm:$0xff] (!%p1945_p7)  ;;  %v3026_v61 = vunpack.c.l.bf16 (!%p1945_p7), %v800_v54  ;;  %v3034_v3 = vunpack.c.h.bf16 (!%p1945_p7), %v800_v54  ;;  %v818_v5 = vadd.f32 (!%p1945_p7), %v811_v63, %v810_v62  ;;  %v2362_v6 = vld [vmem:[#allocation6 + $0x80] sm:$0xff] (!%p1945_p7)   ;;  %v2363_v7 = vld [vmem:[#allocation6 + $0x48] sm:$0xff] (!%p1945_p7)  }
  0xc4   : > { %2046 = vmatpush3.bf16.msra.mxu0 %v2337_v15  ;;  %728 = vmatprep.mubr.bf16.mxu0 %v1910_v36  ;;  %v3038_v8 = vunpack.c.l.bf16 (!%p1945_p7), %v801_v59  ;;  %v2364_v11 = vld [vmem:[#allocation6 + $0xc8] sm:$0xff] (!%p1945_p7)   ;;  %v3042_v13 = vunpack.c.h.bf16 (!%p1945_p7), %v801_v59  ;;  %v2377_v33 = vld [vmem:[#allocation6 + $0x20] sm:$0xff] (!%p1945_p7)  }
  0xc5   : > { %2068 = vmatpush3.bf16.msra.mxu1 %v2338_v16  ;;  %2047 = vmatprep.subr.bf16.mxu0 %v2339_v17  ;;  %v814_v9 = vmul.f32 (!%p1945_p7), %v3026_v61, %v3026_v61  ;;  %v819_v10 = vadd.f32 (!%p1945_p7), %v818_v5, %v812_v0  ;;  %v2365_v12 = vld [vmem:[#allocation6 + $0x8] sm:$0xff] (!%p1945_p7)   ;;  %v815_v14 = vmul.f32 (!%p1945_p7), %v3034_v3, %v3034_v3  ;;  %v2367_v17 = vld [vmem:[#allocation6 + $0x50] sm:$0xff] (!%p1945_p7)   ;;  %v2378_v34 = vld [vmem:[#allocation6 + $0xa0] sm:$0xff] (!%p1945_p7)  }
  0xc6   : > { %2069 = vmatprep.subr.bf16.mxu1 %v2340_v18  ;;  %768 = vmatprep.mubr.bf16.mxu1 %v1912_v38  ;;  %v2366_v16 = vld [vmem:[#allocation6 + $0x88] sm:$0xff] (!%p1945_p7)   ;;  %v816_v18 = vmul.f32 (!%p1945_p7), %v3038_v8, %v3038_v8 }
  0xc7   : > { %v820_v15 = vadd.f32 (!%p1945_p7), %v819_v10, %v813_v4  ;;  %v2380_v36 = vld [vmem:[#allocation6 + $0xe8] sm:$0xff] (!%p1945_p7)   ;;  %v2394_v4 = vld [vmem:[#allocation6 + $0x180] sm:$0xff] (!%p1945_p7)   ;;  %v2401_v10 = vld [vmem:[#allocation6 + $0x110] sm:$0xff] (!%p1945_p7)  }
  0xc8   : > { %2048 = vmatpush3.bf16.msra.mxu0 %v2341_v19  ;;  %v2382_v38 = vld [vmem:[#allocation6 + $0xa8] sm:$0xff] (!%p1945_p7)  }
  0xc9   : > { %2070 = vmatpush3.bf16.msra.mxu1 %v2342_v20  ;;  %2049 = vmatprep.subr.bf16.mxu0 %v2343_v21  ;;  %v821_v19 = vadd.f32 (!%p1945_p7), %v820_v15, %v814_v9  ;;  %v2368_v20 = vld [vmem:[#allocation6 + $0xd0] sm:$0xff] (!%p1945_p7)   ;;  %v2396_v5 = vld [vmem:[#allocation6 + $0x1c8] sm:$0xff] (!%p1945_p7)   ;;  %v2406_v15 = vld [vmem:[#allocation6 + $0x198] sm:$0xff] (!%p1945_p7)  }
  0xca   : > { %2071 = vmatprep.subr.bf16.mxu1 %v2344_v22  ;;  %v2369_v21 = vld [vmem:[#allocation6 + $0x10] sm:$0xff] (!%p1945_p7)   ;;  %v817_v22 = vmul.f32 (!%p1945_p7), %v3042_v13, %v3042_v13 }
  0xcb   : > { %v2400_v9 = vld [vmem:[#allocation6 + $0x1d0] sm:$0xff] (!%p1945_p7)  }
  0xcc   : > { %2050 = vmatpush3.bf16.msra.mxu0 %v2345_v23  ;;  %v822_v23 = vadd.f32 (!%p1945_p7), %v821_v19, %v815_v14  ;;  %v2405_v14 = vld [vmem:[#allocation6 + $0x118] sm:$0xff] (!%p1945_p7)   ;;  %v2410_v19 = vld [vmem:[#allocation6 + $0x1a0] sm:$0xff] (!%p1945_p7)  }
  0xcd   : > { %2072 = vmatpush3.bf16.msra.mxu1 %v2346_v24  ;;  %2051 = vmatprep.subr.bf16.mxu0 %v2347_v25  ;;  %v2370_v24 = vld [vmem:[#allocation6 + $0x90] sm:$0xff] (!%p1945_p7)   ;;  %v2371_v25 = vld [vmem:[#allocation6 + $0x58] sm:$0xff] (!%p1945_p7)  }
  0xce   : > { %2073 = vmatprep.subr.bf16.mxu1 %v2348_v26  ;;  %v823_v26 = vadd.f32 (!%p1945_p7), %v822_v23, %v816_v18  ;;  %v2409_v18 = vld [vmem:[#allocation6 + $0x120] sm:$0xff] (!%p1945_p7)   ;;  %v2414_v23 = vld [vmem:[#allocation6 + $0x1a8] sm:$0xff] (!%p1945_p7)  }
  0xd0   : > { %2052 = vmatpush3.bf16.msra.mxu0 %v2349_v27  ;;  %v2372_v27 = vld [vmem:[#allocation6 + $0xd8] sm:$0xff] (!%p1945_p7)  }
  0xd1   : > { %2074 = vmatpush3.bf16.msra.mxu1 %v2350_v28  ;;  %2053 = vmatprep.subr.bf16.mxu0 %v2351_v29  ;;  %v2373_v28 = vld [vmem:[#allocation6 + $0x18] sm:$0xff] (!%p1945_p7)   ;;  %v824_v29 = vadd.f32 (!%p1945_p7), %v823_v26, %v817_v22  ;;  %v2413_v22 = vld [vmem:[#allocation6 + $0x128] sm:$0xff] (!%p1945_p7)   ;;  %v2417_v26 = vld [vmem:[#allocation6 + $0x130] sm:$0xff] (!%p1945_p7)  }
  0xd2   : > { %2075 = vmatprep.subr.bf16.mxu1 %v2352_v30  ;;  %v2374_v30 = vld [vmem:[#allocation6 + $0x98] sm:$0xff] (!%p1945_p7)  }
  0xd3   : > { %825 = vadd.xlane.f32.xlu0 (!%p1945_p7), %v824_v29  ;;  %v2420_v29 = vld [vmem:[#allocation6 + $0x1f8] sm:$0xff] (!%p1945_p7)  }
  0xd4   : > { %2054 = vmatpush3.bf16.msra.mxu0 %v2353_v31  ;;  %v2375_v31 = vld [vmem:[#allocation6 + $0x60] sm:$0xff] (!%p1945_p7)  }
  0xd5   : > { %2076 = vmatpush3.bf16.msra.mxu1 %v2354_v32  ;;  %2083 = vmatprep.subr.bf16.mxu0 (!%p1945_p7), %v2359_v60  ;;  %v2376_v32 = vld [vmem:[#allocation6 + $0xe0] sm:$0xff] (!%p1945_p7)  }
  0xd6   : > { %2105 = vmatprep.subr.bf16.mxu1 (!%p1945_p7), %v2360_v1 }
  0xd7   : > { %729 = vmatmul.mubr.bf16.vlgmr.msra.gmra.mrb[0].mxu0 %v1909_v35  ;;  %v2379_v35 = vld [vmem:[#allocation6 + $0x68] sm:$0xff] (!%p1945_p7)  }
  0xd8   : > { %769 = vmatmul.mubr.bf16.vlgmr.msra.gmra.mrb[0].mxu1 %v1911_v37  ;;  %2084 = vmatpush3.bf16.msra.mxu0 (!%p1945_p7), %v2361_v2  ;;  %v2381_v37 = vld [vmem:[#allocation6 + $0x28] sm:$0xff] (!%p1945_p7)  }
  0xd9   : > { %2106 = vmatpush3.bf16.msra.mxu1 (!%p1945_p7), %v2362_v6  ;;  %2085 = vmatprep.subr.bf16.mxu0 (!%p1945_p7), %v2363_v7  ;;  %v2398_v6 = vld [vmem:[#allocation6 + $0x188] sm:$0xff] (!%p1945_p7)   ;;  %v2399_v7 = vld [vmem:[#allocation6 + $0x150] sm:$0xff] (!%p1945_p7)  }
  0xda   : > { %2107 = vmatprep.subr.bf16.mxu1 (!%p1945_p7), %v2364_v11  ;;  %v2402_v11 = vld [vmem:[#allocation6 + $0x190] sm:$0xff] (!%p1945_p7)  }
  0xdc   : > { %2086 = vmatpush3.bf16.msra.mxu0 (!%p1945_p7), %v2365_v12  ;;  %v2403_v12 = vld [vmem:[#allocation6 + $0x158] sm:$0xff] (!%p1945_p7)  }
  0xdd   : > { %2108 = vmatpush3.bf16.msra.mxu1 (!%p1945_p7), %v2366_v16  ;;  %2087 = vmatprep.subr.bf16.mxu0 (!%p1945_p7), %v2367_v17  ;;  %v2407_v16 = vld [vmem:[#allocation6 + $0x160] sm:$0xff] (!%p1945_p7)  }
  0xde   : > { %2109 = vmatprep.subr.bf16.mxu1 (!%p1945_p7), %v2368_v20  ;;  %v2408_v17 = vld [vmem:[#allocation6 + $0x1e0] sm:$0xff] (!%p1945_p7)   ;;  %v2411_v20 = vld [vmem:[#allocation6 + $0x168] sm:$0xff] (!%p1945_p7)  }
  0xe0   : > { %2088 = vmatpush3.bf16.msra.mxu0 (!%p1945_p7), %v2369_v21  ;;  %v2412_v21 = vld [vmem:[#allocation6 + $0x1e8] sm:$0xff] (!%p1945_p7)  }
  0xe1   : > { %2110 = vmatpush3.bf16.msra.mxu1 (!%p1945_p7), %v2370_v24  ;;  %2089 = vmatprep.subr.bf16.mxu0 (!%p1945_p7), %v2371_v25  ;;  %v2415_v24 = vld [vmem:[#allocation6 + $0x170] sm:$0xff] (!%p1945_p7)  }
  0xe2   : > { %2111 = vmatprep.subr.bf16.mxu1 (!%p1945_p7), %v2372_v27  ;;  %v2416_v25 = vld [vmem:[#allocation6 + $0x1f0] sm:$0xff] (!%p1945_p7)  }
  0xe3   : > { %v2418_v27 = vld [vmem:[#allocation6 + $0x1b0] sm:$0xff] (!%p1945_p7)  }
  0xe4   : > { %2090 = vmatpush3.bf16.msra.mxu0 (!%p1945_p7), %v2373_v28  ;;  %v2419_v28 = vld [vmem:[#allocation6 + $0x178] sm:$0xff] (!%p1945_p7)  }
  0xe5   : > { %2112 = vmatpush3.bf16.msra.mxu1 (!%p1945_p7), %v2374_v30  ;;  %2091 = vmatprep.subr.bf16.mxu0 (!%p1945_p7), %v2375_v31  ;;  %v2421_v30 = vld [vmem:[#allocation6 + $0x138] sm:$0xff] (!%p1945_p7)  }
  0xe6   : > { %2113 = vmatprep.subr.bf16.mxu1 (!%p1945_p7), %v2376_v32  ;;  %v2422_v31 = vld [vmem:[#allocation6 + $0x1b8] sm:$0xff] (!%p1945_p7)  }
  0xe8   : > { %2092 = vmatpush3.bf16.msra.mxu0 (!%p1945_p7), %v2377_v33 }
  0xe9   : > { %2114 = vmatpush3.bf16.msra.mxu1 (!%p1945_p7), %v2378_v34  ;;  %2093 = vmatprep.subr.bf16.mxu0 (!%p1945_p7), %v2379_v35 }
  0xea   : > { %2115 = vmatprep.subr.bf16.mxu1 (!%p1945_p7), %v2380_v36  ;;  %v2423_v36 = vld [vmem:[#allocation8] sm:$0xff] (!%p1945_p7)  }
  0xec   : > { %2094 = vmatpush3.bf16.msra.mxu0 (!%p1945_p7), %v2381_v37  ;;  %v2701_v37 = vmov (!%p1945_p7), 0.0  }
  0xed   : > { %2116 = vmatpush3.bf16.msra.mxu1 (!%p1945_p7), %v2382_v38  ;;  %v2424_v38 = vld [vmem:[#allocation8 + $0x8] sm:$0xff] (!%p1945_p7)  }
 0x1aa   : > { %v2055_v39 = vpop.f32.mrb[0].mxu0 }
 0x1ab   : > { %v2077_v40 = vpop.f32.mrb[0].mxu1  ;;  %v2056_v41 = vpop.f32.mrb[1].mxu0 }
 0x1ac   : > { %v2078_v42 = vpop.f32.mrb[1].mxu1  ;;  %v2057_v43 = vadd.f32 %v2056_v41, %v2055_v39  ;;  %v2058_v45 = vpop.f32.mrb[2].mxu0  ;;  %v2383_v39 = vld [vmem:[#allocation6 + $0x70] sm:$0xff] (!%p1945_p7)  }
 0x1ad   : > { %v2079_v44 = vadd.f32 %v2078_v42, %v2077_v40  ;;  %v2080_v46 = vpop.f32.mrb[2].mxu1  ;;  %v2059_v48 = vpop.f32.mrb[3].mxu0  ;;  %781 = sbr.rel (%p1945_p7) target bundleno = 1300 (0x514), region = 80  ;;  %v2384_v40 = vld [vmem:[#allocation6 + $0xf0] sm:$0xff] (!%p1945_p7)   ;;  %2095 = vmatprep.subr.bf16.mxu0 (!%p1945_p7), %v2383_v39  ;;  %v2389_v45 = vld [vmem:[#allocation6 + $0x38] sm:$0xff] (!%p1945_p7)   ;;  %v2427_v39 = vld [vmem:[#allocation8 + $0x20] sm:$0xff] (!%p1945_p7)  }
 0x1ae   : > { %v2081_v49 = vpop.f32.mrb[3].mxu1  ;;  %v2385_v41 = vld [vmem:[#allocation6 + $0x30] sm:$0xff] (!%p1945_p7)   ;;  %2117 = vmatprep.subr.bf16.mxu1 (!%p1945_p7), %v2384_v40  ;;  %v2390_v46 = vld [vmem:[#allocation6 + $0xb8] sm:$0xff] (!%p1945_p7)   ;;  %v2392_v48 = vld [vmem:[#allocation6 + $0x1c0] sm:$0xff] (!%p1945_p7)  }
 0x1af   : > { %v771_v50 = vadd.f32 %v2079_v44, %v2057_v43  ;;  %v2386_v42 = vld [vmem:[#allocation6 + $0xb0] sm:$0xff] (!%p1945_p7)   ;;  %v2387_v43 = vld [vmem:[#allocation6 + $0x78] sm:$0xff] (!%p1945_p7)   ;;  %2096 = vmatpush3.bf16.msra.mxu0 (!%p1945_p7), %v2385_v41  ;;  %v826_v49 = vpop.xlane.xlu0 (!%p1945_p7), %825  ;;  %v2428_v40 = vld [vmem:[#allocation8 + $0x28] sm:$0xff] (!%p1945_p7)  }
 0x1b0   : > { %v2388_v44 = vld [vmem:[#allocation6 + $0xf8] sm:$0xff] (!%p1945_p7)   ;;  %2118 = vmatpush3.bf16.msra.mxu1 (!%p1945_p7), %v2386_v42  ;;  %2097 = vmatprep.subr.bf16.mxu0 (!%p1945_p7), %v2387_v43  ;;  %v2429_v41 = vld [vmem:[#allocation8 + $0x30] sm:$0xff] (!%p1945_p7)   ;;  %v2431_v43 = vld [vmem:[#allocation8 + $0x40] sm:$0xff] (!%p1945_p7)  }
 0x1b1   : > { %v776_v51 = vadd.f32 %v771_v50, %v423_v47  ;;  %2119 = vmatprep.subr.bf16.mxu1 (!%p1945_p7), %v2388_v44  ;;  %v2391_v47 = vld [vmem:[#allocation6 + $0x140] sm:$0xff] (!%p1945_p7)   ;;  %v827_v50 = vmax.f32 (!%p1945_p7), %v826_v49, 1e-24  ;;  %v2430_v42 = vld [vmem:[#allocation8 + $0x38] sm:$0xff] (!%p1945_p7)   ;;  %v2432_v44 = vld [vmem:[#allocation8 + $0x48] sm:$0xff] (!%p1945_p7)  }
 0x1b3   : > { %777 = vst [vmem:[#allocation2] sm:$0xff] %v776_v51  ;;  %2098 = vmatpush3.bf16.msra.mxu0 (!%p1945_p7), %v2389_v45  ;;  %2439 = vrsqrt.f32 (!%p1945_p7), %v827_v50  ;;  %v2433_v45 = vld [vmem:[#allocation8 + $0x50] sm:$0xff] (!%p1945_p7)  }
 0x1b4   : > { %2120 = vmatpush3.bf16.msra.mxu1 %v2390_v46  ;;  %2127 = vmatprep.subr.bf16.mxu0 %v2391_v47  ;;  %v2434_v46 = vld [vmem:[#allocation8 + $0x58] sm:$0xff]   ;;  %v2435_v47 = vld [vmem:[#allocation8 + $0x60] sm:$0xff]  }
 0x1b5   : > { %2149 = vmatprep.subr.bf16.mxu1 %v2392_v48  ;;  %v2436_v48 = vld [vmem:[#allocation8 + $0x68] sm:$0xff]  }
 0x1bd   : > { %v3050_v51 = vpop.eup %2439 }
 0x1be   : > { %v830_v52 = vmul.f32 %v3050_v51, %v3020_v56  ;;  %v832_v53 = vmul.f32 %v3050_v51, %v3024_v58  ;;  %v829_v54 = vmul.f32 %v3050_v51, %v3018_v55  ;;  %v831_v59 = vmul.f32 %v3050_v51, %v3022_v57  ;;  %v2393_v56 = vld [vmem:[#allocation6 + $0x100] sm:$0xff]   ;;  %v2395_v58 = vld [vmem:[#allocation6 + $0x148] sm:$0xff]  }
 0x1bf   : > { %v834_v60 = vmul.f32 %v3050_v51, %v3034_v3  ;;  %v836_v62 = vmul.f32 %v3050_v51, %v3042_v13  ;;  %v2397_v3 = vld [vmem:[#allocation6 + $0x108] sm:$0xff]   ;;  %v2404_v13 = vld [vmem:[#allocation6 + $0x1d8] sm:$0xff]   ;;  %v833_v32 = vmul.f32 %v3050_v51, %v3026_v61  ;;  %v835_v33 = vmul.f32 %v3050_v51, %v3038_v8  ;;  %v2425_v61 = vld [vmem:[#allocation8 + $0x10] sm:$0xff]  }
 0x1c0   : > { %v838_v63 = vpack.c.bf16 %v830_v52, %v830_v52  ;;  %v840_v0 = vpack.c.bf16 %v832_v53, %v832_v53  ;;  %v837_v1 = vpack.c.bf16 %v829_v54, %v829_v54  ;;  %v839_v2 = vpack.c.bf16 %v831_v59, %v831_v59  ;;  %v2426_v8 = vld [vmem:[#allocation8 + $0x18] sm:$0xff]  }
 0x1c1   : > { %v842_v55 = vpack.c.bf16 %v834_v60, %v834_v60  ;;  %v844_v57 = vpack.c.bf16 %v836_v62, %v836_v62  ;;  %v841_v34 = vpack.c.bf16 %v833_v32, %v833_v32  ;;  %v843_v35 = vpack.c.bf16 %v835_v33, %v835_v33  ;;  %v1947_v51 = vld [vmem:[%s3158_s2] ss:$0 sm:$0xff] }
 0x1c2   : > { %1396 = vmatprep.mubr.bf16.mxu0 %v838_v63  ;;  %1436 = vmatprep.mubr.bf16.mxu1 %v840_v0 }
 0x1c3   : > { %1397 = vmatmul.mubr.bf16.vlgmr.msra.gmra.mrb[0].mxu0 %v837_v1  ;;  %1437 = vmatmul.mubr.bf16.vlgmr.msra.gmra.mrb[0].mxu1 %v839_v2 }
 0x1c4   : > { %2128 = vmatpush3.bf16.msra.mxu0 %v2393_v56  ;;  %2150 = vmatpush3.bf16.msra.mxu1 %v2394_v4 }
 0x1c5   : > { %1476 = vmatprep.mubr.bf16.mxu0 %v842_v55  ;;  %1516 = vmatprep.mubr.bf16.mxu1 %v844_v57 }
 0x1c6   : > { %2129 = vmatprep.subr.bf16.mxu0 %v2395_v58  ;;  %2151 = vmatprep.subr.bf16.mxu1 %v2396_v5 }
 0x1c8   : > { %2130 = vmatpush3.bf16.msra.mxu0 %v2397_v3  ;;  %2152 = vmatpush3.bf16.msra.mxu1 %v2398_v6 }
 0x1c9   : > { %2131 = vmatprep.subr.bf16.mxu0 %v2399_v7  ;;  %2153 = vmatprep.subr.bf16.mxu1 %v2400_v9 }
 0x1cc   : > { %2132 = vmatpush3.bf16.msra.mxu0 %v2401_v10  ;;  %2154 = vmatpush3.bf16.msra.mxu1 %v2402_v11 }
 0x1cd   : > { %2133 = vmatprep.subr.bf16.mxu0 %v2403_v12  ;;  %2155 = vmatprep.subr.bf16.mxu1 %v2404_v13 }
 0x1d0   : > { %2134 = vmatpush3.bf16.msra.mxu0 %v2405_v14  ;;  %2156 = vmatpush3.bf16.msra.mxu1 %v2406_v15  ;;  %v2437_v14 = vld [vmem:[#allocation8 + $0x70] sm:$0xff]   ;;  %v2438_v15 = vld [vmem:[#allocation8 + $0x78] sm:$0xff]  }
 0x1d1   : > { %2135 = vmatprep.subr.bf16.mxu0 %v2407_v16  ;;  %2157 = vmatprep.subr.bf16.mxu1 %v2408_v17  ;;  %v2012_v16 = vld [vmem:[%s3160_s4] ss:$0 sm:$0xff] }
 0x1d4   : > { %2136 = vmatpush3.bf16.msra.mxu0 %v2409_v18  ;;  %2158 = vmatpush3.bf16.msra.mxu1 %v2410_v19 }
 0x1d5   : > { %2137 = vmatprep.subr.bf16.mxu0 %v2411_v20  ;;  %2159 = vmatprep.subr.bf16.mxu1 %v2412_v21 }
 0x1d8   : > { %2138 = vmatpush3.bf16.msra.mxu0 %v2413_v22  ;;  %2160 = vmatpush3.bf16.msra.mxu1 %v2414_v23 }
 0x1d9   : > { %2139 = vmatprep.subr.bf16.mxu0 %v2415_v24  ;;  %2161 = vmatprep.subr.bf16.mxu1 %v2416_v25  ;;  %v782_v24 = vld [vmem:[#allocation2] sm:$0xff] }
 0x1da   : > { %v1946_v25 = vld [vmem:[%s3163_s7] ss:$0 sm:$0xff] }
 0x1dc   : > { %2140 = vmatpush3.bf16.msra.mxu0 %v2417_v26  ;;  %2162 = vmatpush3.bf16.msra.mxu1 %v2418_v27  ;;  %v790_v26 = vadd.f32 %v1946_v25, %v782_v24 }
 0x1dd   : > { %2141 = vmatprep.subr.bf16.mxu0 %v2419_v28  ;;  %2163 = vmatprep.subr.bf16.mxu1 %v2420_v29  ;;  %v2022_v28 = vld [vmem:[%s3160_s4 + $0x1] ss:$0 sm:$0xff] }
 0x1de   : > { %v791_v27 = vmul.f32 %v790_v26, %v790_v26 }
 0x1e0   : > { %2142 = vmatpush3.bf16.msra.mxu0 %v2421_v30  ;;  %2164 = vmatpush3.bf16.msra.mxu1 %v2422_v31 }
 0x1e1   : > { %2189 = vmatprep.subr.bf16.mxu0 %v2701_v37  ;;  %2209 = vmatprep.subr.bf16.mxu1 %v2701_v37 }
 0x1e2   : > { %792 = vadd.xlane.f32.xlu0 %v791_v27 }
 0x1e3   : > { %1477 = vmatmul.mubr.bf16.vlgmr.msra.gmra.mrb[4].mxu0 %v841_v34  ;;  %1517 = vmatmul.mubr.bf16.vlgmr.msra.gmra.mrb[4].mxu1 %v843_v35 }
 0x1e4   : > { %2190 = vmatpush3.bf16.msra.mxu0 %v2423_v36  ;;  %2205 = vmatprep.mubr.msk.bf16.mxu0 %vm2702_vm0, %v2701_v37 }
 0x1e5   : > { %2191 = vmatprep.subr.bf16.mxu0 %v2701_v37  ;;  %2225 = vmatprep.mubr.msk.bf16.mxu1 %vm2702_vm0, %v2701_v37 }
 0x1e6   : > { %2210 = vmatpush3.bf16.msra.mxu1 %v2431_v43 }
 0x1e7   : > { %2211 = vmatprep.subr.bf16.mxu1 %v2701_v37 }
 0x1e8   : > { %2192 = vmatpush3.bf16.msra.mxu0 %v2424_v38 }
 0x1e9   : > { %2193 = vmatprep.subr.bf16.mxu0 %v2701_v37 }
 0x1ea   : > { %2212 = vmatpush3.bf16.msra.mxu1 %v2432_v44 }
 0x1eb   : > { %2213 = vmatprep.subr.bf16.mxu1 %v2701_v37 }
 0x1ec   : > { %2194 = vmatpush3.bf16.msra.mxu0 %v2425_v61 }
 0x1ed   : > { %2195 = vmatprep.subr.bf16.mxu0 %v2701_v37 }
 0x1ee   : > { %2214 = vmatpush3.bf16.msra.mxu1 %v2433_v45 }
 0x1ef   : > { %2215 = vmatprep.subr.bf16.mxu1 %v2701_v37 }
 0x1f0   : > { %2196 = vmatpush3.bf16.msra.mxu0 %v2426_v8 }
 0x1f1   : > { %2197 = vmatprep.subr.bf16.mxu0 %v2701_v37 }
 0x1f2   : > { %2216 = vmatpush3.bf16.msra.mxu1 %v2434_v46 }
 0x1f3   : > { %2217 = vmatprep.subr.bf16.mxu1 %v2701_v37 }
 0x1f4   : > { %2198 = vmatpush3.bf16.msra.mxu0 %v2427_v39 }
 0x1f5   : > { %2199 = vmatprep.subr.bf16.mxu0 %v2701_v37 }
 0x1f6   : > { %2218 = vmatpush3.bf16.msra.mxu1 %v2435_v47 }
 0x1f7   : > { %2219 = vmatprep.subr.bf16.mxu1 %v2701_v37 }
 0x1f8   : > { %2200 = vmatpush3.bf16.msra.mxu0 %v2428_v40 }
 0x1f9   : > { %2201 = vmatprep.subr.bf16.mxu0 %v2701_v37 }
 0x1fa   : > { %2220 = vmatpush3.bf16.msra.mxu1 %v2436_v48 }
 0x1fb   : > { %2221 = vmatprep.subr.bf16.mxu1 %v2701_v37 }
 0x1fc   : > { %2202 = vmatpush3.bf16.msra.mxu0 %v2429_v41 }
 0x1fd   : > { %2203 = vmatprep.subr.bf16.mxu0 %v2701_v37 }
 0x1fe   : > { %2222 = vmatpush3.bf16.msra.mxu1 %v2437_v14 }
 0x1ff   : > { %2223 = vmatprep.subr.bf16.mxu1 %v2701_v37 }
 0x200   : > { %2204 = vmatpush3.bf16.msra.mxu0 %v2430_v42 }
 0x202   : > { %2224 = vmatpush3.bf16.msra.mxu1 %v2438_v15 }
 0x26f   : > { %v793_v36 = vpop.xlane.xlu0 %792 }
 0x270   : > { %v794_v37 = vmax.f32 %v793_v36, 1e-24 }
 0x272   : > { %2441 = vrsqrt.f32 %v794_v37 }
 0x27c   : > { %v2442_v38 = vpop.eup %2441 }
 0x27d   : > { %v796_v61 = vmul.f32 %v2442_v38, %v790_v26 }
 0x27f   : > { %797 = vst [vmem:[#allocation12] sm:$0xff] %v796_v61 }
 0x296   : > { %v2099_v49 = vpop.f32.mrb[0].mxu0  ;;  %v2121_v50 = vpop.f32.mrb[0].mxu1 }
 0x297   : > { %v2100_v52 = vpop.f32.mrb[1].mxu0  ;;  %v2122_v53 = vpop.f32.mrb[1].mxu1 }
 0x298   : > { %v2101_v54 = vadd.f32 %v2100_v52, %v2099_v49  ;;  %v2123_v59 = vadd.f32 %v2122_v53, %v2121_v50  ;;  %v2102_v60 = vpop.f32.mrb[2].mxu0  ;;  %v2124_v62 = vpop.f32.mrb[2].mxu1 }
 0x299   : > { %v2103_v63 = vpop.f32.mrb[3].mxu0  ;;  %v2125_v0 = vpop.f32.mrb[3].mxu1 }
 0x29a   : > { %v1399_v1 = vadd.f32 %v2101_v54, %v1947_v51 }
 0x29c   : > { %v1439_v2 = vadd.f32 %v2123_v59, %v1399_v1 }
 0x2b6   : > { %v2143_v56 = vpop.f32.mrb[4].mxu0  ;;  %v2165_v4 = vpop.f32.mrb[4].mxu1 }
 0x2b7   : > { %v2144_v58 = vpop.f32.mrb[5].mxu0  ;;  %v2166_v5 = vpop.f32.mrb[5].mxu1 }
 0x2b8   : > { %v2145_v55 = vadd.f32 %v2144_v58, %v2143_v56  ;;  %v2167_v57 = vadd.f32 %v2166_v5, %v2165_v4  ;;  %v2146_v3 = vpop.f32.mrb[6].mxu0  ;;  %v2168_v6 = vpop.f32.mrb[6].mxu1 }
 0x2b9   : > { %v2147_v7 = vpop.f32.mrb[7].mxu0  ;;  %v2169_v9 = vpop.f32.mrb[7].mxu1 }
 0x2ba   : > { %v1479_v10 = vadd.f32 %v2145_v55, %v1439_v2 }
 0x2bc   : > { %v1519_v11 = vadd.f32 %v2167_v57, %v1479_v10 }
 0x2be   : > { %v1524_v12 = vmax.f32 %v1519_v11, 0.0 }
 0x2c0   : > { %v1525_v13 = vpack.c.bf16 %v1524_v12, %v1524_v12 }
 0x2c2   : > { %2206 = vmatmul.mubr.bf16.vlgmr.msra.gmra.mrb[8].mxu0 %v1525_v13 }
 0x395   : > { %v1631_v17 = vpop.f32.mrb[8].mxu0 }
 0x396   : > { %v1632_v18 = vadd.f32 %v2012_v16, %v1631_v17  ;;  %v2207_v19 = vpop.f32.mrb[9].mxu0 }
 0x397   : > { %v1634_v20 = vpop.f32.mrb[10].mxu0 }
 0x398   : > { %v1637_v21 = vmax.f32 %v1632_v18, 0.0  ;;  %v2208_v22 = vpop.f32.mrb[11].mxu0 }
 0x39a   : > { %v1638_v23 = vpack.c.bf16 %v1637_v21, %v1637_v21 }
 0x39c   : > { %2226 = vmatmul.mubr.bf16.vlgmr.msra.gmra.mrb[8].mxu1 %v1638_v23 }
 0x46f   : > { %v1746_v29 = vpop.f32.mrb[8].mxu1 }
 0x470   : > { %v1747_v30 = vadd.f32 %v2022_v28, %v1746_v29  ;;  %v2227_v31 = vpop.f32.mrb[9].mxu1 }
 0x471   : > { %v1749_v32 = vpop.f32.mrb[10].mxu1 }
 0x472   : > { %v1752_v33 = vmax.f32 %v1747_v30, 0.0  ;;  %v2228_v34 = vpop.f32.mrb[11].mxu1 }
 0x474   : > { %v1753_v35 = vmul.f32 %v1752_v33, %v1752_v33 }
 0x476   : > { %1754 = vadd.xlane.f32.xlu1 %v1753_v35 }
 0x503   : > { %v1755_v8 = vpop.xlane.xlu1 %1754 }
 0x504   : > { %v1756_v39 = vmax.f32 %v1755_v8, 1e-24 }
 0x506   : > { %2443 = vrsqrt.f32 %v1756_v39 }
 0x510   : > { %v2444_v40 = vpop.eup %2443 }
 0x511   : > { %v1758_v41 = vmul.f32 %v2444_v40, %v1752_v33 }
 0x513   : > { %1759 = vst [vmem:[#allocation13] sm:$0xff] %v1758_v41 }
 0x514 PF: > { %p2277_p1 = scmp.eq.s32.totalorder %s2774_s13, 1  ;;  %s2703_s28 = smov [#allocation12]  }
 0x515   : > { %s1767_s26 = sshll.u32 %s2703_s28, 4  ;;  %s2704_s16 = smov [#allocation13]   ;;  %s1768_s26 = int_to_ptr.vmem [resolvable:$true] %s1767_s26 }
 0x516   : > { %s1778_s9 = sshll.u32 %s2704_s16, 4  ;;  %s2589_s8 = scalar_lea.vmem %s1768_s26, 128  ;;  %s1779_s9 = int_to_ptr.vmem [resolvable:$true] %s1778_s9 }
 0x517   : > { %p2590_p10 = scmp.ne.s32.totalorder %s1768_s26, %s2589_s8  ;;  %p2596_p5 = scmp.lt.s32.totalorder %s1768_s26, %s1768_s26 }
 0x518   : > { %p2597_p6 = scmp.lt.s32.totalorder %s2589_s8, %s2589_s8 }
 0x519   : > { %p2591_p2 = pnand %p2590_p10, %p2277_p1 }
 0x51a   : > { %p2598_p11 = por %p2597_p6, %p2596_p5 }
 0x51b   : > { %p2592_p4 = pneg %p2591_p2 }
 0x51d   : > { %p2599_p9 = pnand %p2598_p11, %p2592_p4 }
 0x51f   : > { %2602 = shalt.err (!%p2599_p9)
}
 0x520   : > { %s3208_s23 = sld [smem:[#allocation24_spill]] }
 0x526   : > { %s2603_s24 = scalar_lea.hbm %s3208_s23, 128 }
 0x527   : > { %p2604_p12 = scmp.ne.s32.totalorder %s3208_s23, %s2603_s24  ;;  %p2609_p13 = scmp.lt.u32.totalorder %s2603_s24, %s3208_s23 }
 0x529   : > { %p2605_p0 = pnand %p2604_p12, %p2277_p1 }
 0x52b   : > { %p2606_p3 = pneg %p2605_p0 }
 0x52d   : > { %p2611_p8 = pnand %p2609_p13, %p2606_p3 }
 0x52f   : > { %2614 = shalt.err (!%p2611_p8)
}
 0x530   : > { %2246 = dma.vmem_to_hbm [thread:$0]  (%p2277_p1), %s1768_s26, 128, %s3208_s23, [#allocation5]  }
 0x531   : > { %s2615_s5 = scalar_lea.vmem %s1779_s9, 128  ;;  %p2622_p4 = scmp.lt.s32.totalorder %s1779_s9, %s1779_s9 }
 0x532   : > { %p2616_p7 = scmp.ne.s32.totalorder %s1779_s9, %s2615_s5  ;;  %p2623_p5 = scmp.lt.s32.totalorder %s2615_s5, %s2615_s5 }
 0x534   : > { %p2617_p10 = pnand %p2616_p7, %p2277_p1  ;;  %p2624_p6 = por %p2623_p5, %p2622_p4 }
 0x536   : > { %p2618_p2 = pneg %p2617_p10 }
 0x538   : > { %p2625_p11 = pnand %p2624_p6, %p2618_p2 }
 0x53a   : > { %2628 = shalt.err (!%p2625_p11)
}
 0x53b   : > { %s3209_s1 = sld [smem:[#allocation25_spill]] }
 0x541   : > { %s2629_s27 = scalar_lea.hbm %s3209_s1, 128 }
 0x542   : > { %p2630_p9 = scmp.ne.s32.totalorder %s3209_s1, %s2629_s27  ;;  %p2635_p3 = scmp.lt.u32.totalorder %s2629_s27, %s3209_s1 }
 0x544   : > { %p2631_p12 = pnand %p2630_p9, %p2277_p1 }
 0x546   : > { %p2632_p0 = pneg %p2631_p12 }
 0x548   : > { %p2637_p13 = pnand %p2635_p3, %p2632_p0 }
 0x54a   : > { %2640 = shalt.err (!%p2637_p13)
}
 0x54b   : > { %2248 = dma.vmem_to_hbm [thread:$0]  (%p2277_p1), %s1779_s9, 128, %s3209_s1, [#allocation14]  }
 0x54c   : > { %2670 = dma.done.wait (%p2277_p1), [#allocation5], 128  }
 0x54d   : > { %2672 = vsyncadd (%p2277_p1), [#allocation5], 4294967168 }
 0x54e   : > { %2674 = dma.done.wait (%p2277_p1), [#allocation14], 128  }
 0x54f   : > { %2676 = vsyncadd (%p2277_p1), [#allocation14], 4294967168 }
 0x550 PF: > { %s3210_s12 = sld [smem:[#allocation20_spill]]  ;;  %s3211_s21 = sld [smem:[#allocation21_spill]] }
 0x551   : > { %s3212_s30 = smov %s2683_s10  ;;  %s3213_s10 = smov %s2687_s11 }
 0x556   : > { %p24_p8 = scmp.ge.s32.totalorder %s3210_s12, 4   ;;  %s3214_s11 = smov %s3211_s21 }
 0x558   :  { %26 = sbr.rel (!%p24_p8) target bundleno = 12 (0xc), region = 131 }
 0x55f   :  { %1795 = vsyncpa [#allocation4], 1 }
 0x560   :  { %1797 = vsyncpa [#allocation4 + $0x1], 1 }
 0x561   :  { %1798 = vsyncpa [#allocation7], 1 }
 0x562   :  { %1799 = vsyncpa [#allocation10], 1 }
 0x563   :  { %1801 = vsyncpa [#allocation10 + $0x1], 1 }
 0x564   :  { %1802 = vsyncpa [#allocation5], 1 }
 0x565   :  { %1804 = vsyncpa [#allocation5 + $0x1], 1 }
 0x566   :  { %1805 = vsyncpa [#allocation14], 1 }

</bundles_post_ra>
